<compile_context>
chip_gen: v5e
topology: v5e:2x2
jax: 0.10.0
libtpu: 0.0.40
codegen_flags: <defaults>
</compile_context>

<pallas_src>
import functools

import jax
import jax.numpy as jnp
from jax.experimental import pallas as pl
from jax.experimental.pallas import tpu as pltpu


_LANE = 128       # f32 lane width of a vreg
_TB_ALIGN = 16    # sublane granularity valid for both f32 (8) and bf16 (16) tiles


def _round_up(x, m):
    return ((x + m - 1) // m) * m


# ----------------------------- kernels --------------------------------------

def _mlp_kernel(obs_ref, w1_ref, b1_ref, w2_ref, b2_ref, w3_ref, b3_ref, out_ref):
    """relu(relu(x@W1+b1)@W2+b2)@W3+b3 on a [TB, ob_dim] tile of observations.

    obs arrives in f32 and is cast to bf16 in-kernel (free VPU filler under the
    MXU/DMA slack).  Weights are bf16 [in, out]; accumulation / bias / ReLU in f32.
    """
    x = obs_ref[...].astype(w1_ref.dtype)
    h = jnp.dot(x, w1_ref[...], preferred_element_type=jnp.float32)
    h = jnp.maximum(h + b1_ref[...], 0.0)
    h = jnp.dot(h.astype(w2_ref.dtype), w2_ref[...], preferred_element_type=jnp.float32)
    h = jnp.maximum(h + b2_ref[...], 0.0)
    out = jnp.dot(h.astype(w3_ref.dtype), w3_ref[...],
                  preferred_element_type=jnp.float32) + b3_ref[...]
    out_ref[...] = out.astype(out_ref.dtype)


def _softmax_dim0_stats_kernel(x_ref, m_ref, s_ref, *, valid_rows, tile_rows):
    """Pass 1: online per-column (max, sum-exp) over the batch axis (dim=0).

    Padded batch rows (global row index >= valid_rows) are masked to -inf so they
    never touch the max or the denominator.  m_ref / s_ref are resident [1, AC_PAD]
    accumulators across the 'arbitrary' grid axis.
    """
    i = pl.program_id(0)

    @pl.when(i == 0)
    def _():
        m_ref[...] = jnp.full(m_ref.shape, -jnp.inf, dtype=m_ref.dtype)
        s_ref[...] = jnp.zeros(s_ref.shape, dtype=s_ref.dtype)

    row = i * tile_rows + jax.lax.broadcasted_iota(jnp.int32, x_ref.shape, 0)
    x = jnp.where(row < valid_rows, x_ref[...].astype(jnp.float32), -jnp.inf)

    m_old = m_ref[...]
    m_new = jnp.maximum(m_old, jnp.max(x, axis=0, keepdims=True))
    alpha = jnp.exp(m_old - m_new)                     # 0 on the first tile
    s_ref[...] = alpha * s_ref[...] + jnp.sum(jnp.exp(x - m_new), axis=0, keepdims=True)
    m_ref[...] = m_new


def _softmax_dim0_norm_kernel(x_ref, m_ref, s_ref, o_ref):
    """Pass 2: probs = exp(x - max) / sumexp (exact division: probs must sum to 1)."""
    x = x_ref[...].astype(jnp.float32)
    o_ref[...] = jnp.exp(x - m_ref[...]) / s_ref[...]


# ----------------------------- wrappers --------------------------------------

def prepare_kernel_params(params):
    """Pad hidden / action dims up to 128 lanes and cast weights to bf16.

    `params` = (w1, b1, w2, b2, w3, b3) with w [in, out] f32, b [1, out] f32
    (pre-transposed relative to PyTorch's nn.Linear [out, in]).  Zero padding is
    exact: padded hidden units stay 0 through ReLU, padded output columns stay 0
    and are sliced off by the wrappers.
    """
    w1, b1, w2, b2, w3, b3 = params
    hidden = w1.shape[1]
    ac_dim = w3.shape[1]
    h_pad = _round_up(hidden, _LANE)
    ac_pad = _round_up(ac_dim, _LANE)

    def pad_w(w, rows, cols):
        return jnp.pad(w, ((0, rows - w.shape[0]), (0, cols - w.shape[1]))).astype(jnp.bfloat16)

    def pad_b(b, cols):
        return jnp.pad(b, ((0, 0), (0, cols - b.shape[1]))).astype(jnp.float32)

    return (
        pad_w(w1, w1.shape[0], h_pad), pad_b(b1, h_pad),
        pad_w(w2, h_pad, h_pad), pad_b(b2, h_pad),
        pad_w(w3, h_pad, ac_pad), pad_b(b3, ac_pad),
    )


def _batch_tiling(B, block_b):
    """Batch tile: big (overhead-bound kernel), aligned to 16 sublanes, and clamped so
    the grid keeps >=2 steps when B allows (both v7x TensorCores get work)."""
    block_b = max(int(block_b), _TB_ALIGN)
    half = _round_up(-(-B // 2), _TB_ALIGN)
    tb = max(_TB_ALIGN, min(block_b, half))
    b_pad = _round_up(B, tb)
    return tb, b_pad


def _mlp_logits_padded(obs, kparams, *, out_dtype, block_b=1024):
    """Tiled MLP. Returns (padded logits [b_pad, AC_PAD], tb).  Padded batch rows /
    columns carry non-meaningful values and must be masked / sliced by the caller."""
    w1, b1, w2, b2, w3, b3 = kparams
    B, ob_dim = obs.shape
    h_pad = w1.shape[1]
    ac_pad = w3.shape[1]

    tb, b_pad = _batch_tiling(B, block_b)
    if b_pad != B:
        obs = jnp.pad(obs, ((0, b_pad - B), (0, 0)))
    grid = (b_pad // tb,)

    flops = 2 * b_pad * (ob_dim * h_pad + h_pad * h_pad + h_pad * ac_pad)
    bytes_accessed = int(
        obs.size * obs.dtype.itemsize
        + sum(int(t.size) * t.dtype.itemsize for t in (w1, b1, w2, b2, w3, b3))
        + b_pad * ac_pad * jnp.dtype(out_dtype).itemsize
    )

    def full(shape):
        return pl.BlockSpec(shape, lambda i: (0, 0))

    logits = pl.pallas_call(
        _mlp_kernel,
        out_shape=jax.ShapeDtypeStruct((b_pad, ac_pad), out_dtype),
        grid=grid,
        in_specs=[
            pl.BlockSpec((tb, ob_dim), lambda i: (i, 0)),
            full(w1.shape), full(b1.shape),
            full(w2.shape), full(b2.shape),
            full(w3.shape), full(b3.shape),
        ],
        out_specs=pl.BlockSpec((tb, ac_pad), lambda i: (i, 0)),
        compiler_params=pltpu.CompilerParams(
            dimension_semantics=("parallel",)),
        cost_estimate=pl.CostEstimate(
            flops=flops, transcendentals=0, bytes_accessed=bytes_accessed),
    )(obs, w1, b1, w2, b2, w3, b3)

    return logits, tb


def policy_forward_discrete(obs, kparams, ac_dim, *, block_b=1024):
    """Returns probs = softmax(mlp(obs), dim=0), shape [B, ac_dim] (Categorical params)."""
    B = obs.shape[0]
    # bf16 logits halve the dominant HBM stream; softmax math is done in f32.
    logits, tb = _mlp_logits_padded(obs, kparams, out_dtype=jnp.bfloat16, block_b=block_b)
    b_pad, ac_pad = logits.shape
    grid = (b_pad // tb,)

    stats_kernel = functools.partial(
        _softmax_dim0_stats_kernel, valid_rows=B, tile_rows=tb)

    m, s = pl.pallas_call(
        stats_kernel,
        out_shape=(jax.ShapeDtypeStruct((1, ac_pad), jnp.float32),
                   jax.ShapeDtypeStruct((1, ac_pad), jnp.float32)),
        grid=grid,
        in_specs=[pl.BlockSpec((tb, ac_pad), lambda i: (i, 0))],
        out_specs=(pl.BlockSpec((1, ac_pad), lambda i: (0, 0)),
                   pl.BlockSpec((1, ac_pad), lambda i: (0, 0))),
        compiler_params=pltpu.CompilerParams(
            dimension_semantics=("arbitrary",)),
    )(logits)

    probs = pl.pallas_call(
        _softmax_dim0_norm_kernel,
        out_shape=jax.ShapeDtypeStruct((b_pad, ac_pad), jnp.float32),
        grid=grid,
        in_specs=[pl.BlockSpec((tb, ac_pad), lambda i: (i, 0)),
                  pl.BlockSpec((1, ac_pad), lambda i: (0, 0)),
                  pl.BlockSpec((1, ac_pad), lambda i: (0, 0))],
        out_specs=pl.BlockSpec((tb, ac_pad), lambda i: (i, 0)),
        compiler_params=pltpu.CompilerParams(
            dimension_semantics=("parallel",)),
    )(logits, m, s)

    # single slice at the very end: drop padded batch rows and padded action columns
    return probs[:B, :ac_dim]


def policy_forward_continuous(obs, kparams, logstd, ac_dim, *, block_b=1024):
    """Returns (mean [B, ac_dim], std [1, ac_dim]) — the Normal distribution params."""
    B = obs.shape[0]
    logits, _ = _mlp_logits_padded(obs, kparams, out_dtype=jnp.float32, block_b=block_b)
    mean = logits[:B, :ac_dim]
    std = jnp.exp(logstd)          # obs-independent: hoisted out of the kernel
    return mean, std


def init_params(key, ob_dim, ac_dim, hidden_size=64):
    """nn.Linear-shaped init; weights stored [in, out], biases [1, out] (f32 masters)."""
    ks = jax.random.split(key, 6)
    dims = [(ob_dim, hidden_size), (hidden_size, hidden_size), (hidden_size, ac_dim)]
    params = []
    for i, (din, dout) in enumerate(dims):
        bound = 1.0 / jnp.sqrt(din)
        w = jax.random.uniform(ks[2 * i], (din, dout), jnp.float32, -bound, bound)
        b = jax.random.uniform(ks[2 * i + 1], (1, dout), jnp.float32, -bound, bound)
        params += [w, b]
    return tuple(params)


# ----------------------------- reference -------------------------------------

def _ref_mlp(obs, kparams, ac_dim):
    """Pure-JAX reference following the same bf16-operand / f32-accumulate path."""
    w1, b1, w2, b2, w3, b3 = kparams
    x = obs.astype(jnp.bfloat16)
    h = jnp.maximum(jnp.dot(x, w1, preferred_element_type=jnp.float32) + b1, 0.0)
    h = jnp.maximum(jnp.dot(h.astype(jnp.bfloat16), w2,
                            preferred_element_type=jnp.float32) + b2, 0.0)
    out = jnp.dot(h.astype(jnp.bfloat16), w3, preferred_element_type=jnp.float32) + b3
    return out[:, :ac_dim]


if __name__ == "__main__":
    B, ob_dim, ac_dim, hidden = 6, 16, 3, 64   # B deliberately not a multiple of 8

    key = jax.random.PRNGKey(0)
    k_obs, k_params = jax.random.split(key)
    obs = jax.random.normal(k_obs, (B, ob_dim), jnp.float32)
    params = init_params(k_params, ob_dim, ac_dim, hidden)
    kparams = prepare_kernel_params(params)
    logstd = jnp.zeros((1, ac_dim), jnp.float32)   # nn.Parameter(torch.zeros(ac_dim))

    # discrete head
    probs = jax.block_until_ready(policy_forward_discrete(obs, kparams, ac_dim))

    # continuous head
    mean, std = policy_forward_continuous(obs, kparams, logstd, ac_dim)
    mean = jax.block_until_ready(mean)
    std = jax.block_until_ready(std)

    # correctness check against a pure-JAX reference (same bf16 matmul path)
    logits_ref = _ref_mlp(obs, kparams, ac_dim)                      # f32 logits
    logits_bf = logits_ref.astype(jnp.bfloat16).astype(jnp.float32)  # discrete head emits bf16
    probs_ref = jax.nn.softmax(logits_bf, axis=0)                    # dim=0, as in PyTorch code

    assert probs.shape == (B, ac_dim) and mean.shape == (B, ac_dim)
    assert jnp.allclose(probs, probs_ref, atol=2e-3, rtol=1e-2)
    assert jnp.allclose(jnp.sum(probs, axis=0), 1.0, atol=1e-4)      # exact normalization now
    assert jnp.allclose(mean, logits_ref, atol=1e-3, rtol=1e-3)
    assert jnp.allclose(std, jnp.exp(logstd), atol=1e-6)

    print("KERNEL_OK")
</pallas_src>

<mosaic_0001>
module attributes {stable_mosaic.version = 11 : i64} {
  func.func @_mlp_kernel(%arg0: i32, %arg1: memref<16x16xf32, #tpu.memory_space<vmem>>, %arg2: memref<16x128xbf16, #tpu.memory_space<vmem>>, %arg3: memref<1x128xf32, #tpu.memory_space<vmem>>, %arg4: memref<128x128xbf16, #tpu.memory_space<vmem>>, %arg5: memref<1x128xf32, #tpu.memory_space<vmem>>, %arg6: memref<128x128xbf16, #tpu.memory_space<vmem>>, %arg7: memref<1x128xf32, #tpu.memory_space<vmem>>, %arg8: memref<16x128xbf16, #tpu.memory_space<vmem>>) attributes {dimension_semantics = [#tpu.dimension_semantics<parallel>], iteration_bounds = array<i64: 1>, scalar_prefetch = 0 : i64, scratch_operands = 0 : i64, tpu.core_type = #tpu.core_type<tc>, window_params = [{transform_indices = @transform_0, window_bounds = array<i64: 16, 16>}, {pipeline_mode = #tpu.pipeline_mode<synchronous>, transform_indices = @transform_1, window_bounds = array<i64: 16, 128>}, {pipeline_mode = #tpu.pipeline_mode<synchronous>, transform_indices = @transform_2, window_bounds = array<i64: 1, 128>}, {pipeline_mode = #tpu.pipeline_mode<synchronous>, transform_indices = @transform_3, window_bounds = array<i64: 128, 128>}, {pipeline_mode = #tpu.pipeline_mode<synchronous>, transform_indices = @transform_4, window_bounds = array<i64: 1, 128>}, {pipeline_mode = #tpu.pipeline_mode<synchronous>, transform_indices = @transform_5, window_bounds = array<i64: 128, 128>}, {pipeline_mode = #tpu.pipeline_mode<synchronous>, transform_indices = @transform_6, window_bounds = array<i64: 1, 128>}, {transform_indices = @transform_7, window_bounds = array<i64: 16, 128>}]} {
    %c0 = arith.constant 0 : index
    %c0_0 = arith.constant 0 : index
    %0 = vector.load %arg1[%c0, %c0_0] : memref<16x16xf32, #tpu.memory_space<vmem>>, vector<16x16xf32>
    %1 = arith.truncf %0 : vector<16x16xf32> to vector<16x16xbf16>
    %c0_1 = arith.constant 0 : index
    %c0_2 = arith.constant 0 : index
    %2 = vector.load %arg2[%c0_1, %c0_2] : memref<16x128xbf16, #tpu.memory_space<vmem>>, vector<16x128xbf16>
    %cst = arith.constant dense<0.000000e+00> : vector<16x128xf32>
    %3 = tpu.matmul %1, %2, %cst {dimension_numbers = #tpu.dot_dimension_numbers<[1], [0], [0], [1], [0, 0, 1, 1], [], []>} : vector<16x16xbf16>, vector<16x128xbf16>, vector<16x128xf32> -> vector<16x128xf32>
    %c0_3 = arith.constant 0 : index
    %c0_4 = arith.constant 0 : index
    %4 = vector.load %arg3[%c0_3, %c0_4] : memref<1x128xf32, #tpu.memory_space<vmem>>, vector<1x128xf32>
    %5 = vector.broadcast %4 : vector<1x128xf32> to vector<16x128xf32>
    %6 = arith.addf %3, %5 : vector<16x128xf32>
    %cst_5 = arith.constant 0.000000e+00 : f32
    %7 = vector.broadcast %cst_5 : f32 to vector<16x128xf32>
    %8 = arith.maximumf %6, %7 : vector<16x128xf32>
    %9 = arith.truncf %8 : vector<16x128xf32> to vector<16x128xbf16>
    %c0_6 = arith.constant 0 : index
    %c0_7 = arith.constant 0 : index
    %10 = vector.load %arg4[%c0_6, %c0_7] : memref<128x128xbf16, #tpu.memory_space<vmem>>, vector<128x128xbf16>
    %cst_8 = arith.constant dense<0.000000e+00> : vector<16x128xf32>
    %11 = tpu.matmul %9, %10, %cst_8 {dimension_numbers = #tpu.dot_dimension_numbers<[1], [0], [0], [1], [0, 0, 1, 1], [], []>} : vector<16x128xbf16>, vector<128x128xbf16>, vector<16x128xf32> -> vector<16x128xf32>
    %c0_9 = arith.constant 0 : index
    %c0_10 = arith.constant 0 : index
    %12 = vector.load %arg5[%c0_9, %c0_10] : memref<1x128xf32, #tpu.memory_space<vmem>>, vector<1x128xf32>
    %13 = vector.broadcast %12 : vector<1x128xf32> to vector<16x128xf32>
    %14 = arith.addf %11, %13 : vector<16x128xf32>
    %cst_11 = arith.constant 0.000000e+00 : f32
    %15 = vector.broadcast %cst_11 : f32 to vector<16x128xf32>
    %16 = arith.maximumf %14, %15 : vector<16x128xf32>
    %17 = arith.truncf %16 : vector<16x128xf32> to vector<16x128xbf16>
    %c0_12 = arith.constant 0 : index
    %c0_13 = arith.constant 0 : index
    %18 = vector.load %arg6[%c0_12, %c0_13] : memref<128x128xbf16, #tpu.memory_space<vmem>>, vector<128x128xbf16>
    %cst_14 = arith.constant dense<0.000000e+00> : vector<16x128xf32>
    %19 = tpu.matmul %17, %18, %cst_14 {dimension_numbers = #tpu.dot_dimension_numbers<[1], [0], [0], [1], [0, 0, 1, 1], [], []>} : vector<16x128xbf16>, vector<128x128xbf16>, vector<16x128xf32> -> vector<16x128xf32>
    %c0_15 = arith.constant 0 : index
    %c0_16 = arith.constant 0 : index
    %20 = vector.load %arg7[%c0_15, %c0_16] : memref<1x128xf32, #tpu.memory_space<vmem>>, vector<1x128xf32>
    %21 = vector.broadcast %20 : vector<1x128xf32> to vector<16x128xf32>
    %22 = arith.addf %19, %21 : vector<16x128xf32>
    %23 = arith.truncf %22 : vector<16x128xf32> to vector<16x128xbf16>
    %c0_17 = arith.constant 0 : index
    %c0_18 = arith.constant 0 : index
    %24 = vector.load %arg8[%c0_17, %c0_18] : memref<16x128xbf16, #tpu.memory_space<vmem>>, vector<16x128xbf16>
    tpu.vector_store %arg8[%c0_17, %c0_18], %23 {strides = array<i32>} : memref<16x128xbf16, #tpu.memory_space<vmem>>, vector<16x128xbf16>,
    return
  }
  func.func @transform_0(%arg0: i32) -> (i32, i32) {
    %c0_i32 = arith.constant 0 : i32
    %c0_i32_0 = arith.constant 0 : i32
    return %arg0, %c0_i32 : i32, i32
  }
  func.func @transform_1(%arg0: i32) -> (i32, i32) {
    %c0_i32 = arith.constant 0 : i32
    %c0_i32_0 = arith.constant 0 : i32
    %c0_i32_1 = arith.constant 0 : i32
    return %c0_i32, %c0_i32_0 : i32, i32
  }
  func.func @transform_2(%arg0: i32) -> (i32, i32) {
    %c0_i32 = arith.constant 0 : i32
    %c0_i32_0 = arith.constant 0 : i32
    %c0_i32_1 = arith.constant 0 : i32
    return %c0_i32, %c0_i32_0 : i32, i32
  }
  func.func @transform_3(%arg0: i32) -> (i32, i32) {
    %c0_i32 = arith.constant 0 : i32
    %c0_i32_0 = arith.constant 0 : i32
    %c0_i32_1 = arith.constant 0 : i32
    return %c0_i32, %c0_i32_0 : i32, i32
  }
  func.func @transform_4(%arg0: i32) -> (i32, i32) {
    %c0_i32 = arith.constant 0 : i32
    %c0_i32_0 = arith.constant 0 : i32
    %c0_i32_1 = arith.constant 0 : i32
    return %c0_i32, %c0_i32_0 : i32, i32
  }
  func.func @transform_5(%arg0: i32) -> (i32, i32) {
    %c0_i32 = arith.constant 0 : i32
    %c0_i32_0 = arith.constant 0 : i32
    %c0_i32_1 = arith.constant 0 : i32
    return %c0_i32, %c0_i32_0 : i32, i32
  }
  func.func @transform_6(%arg0: i32) -> (i32, i32) {
    %c0_i32 = arith.constant 0 : i32
    %c0_i32_0 = arith.constant 0 : i32
    %c0_i32_1 = arith.constant 0 : i32
    return %c0_i32, %c0_i32_0 : i32, i32
  }
  func.func @transform_7(%arg0: i32) -> (i32, i32) {
    %c0_i32 = arith.constant 0 : i32
    %c0_i32_0 = arith.constant 0 : i32
    return %arg0, %c0_i32 : i32, i32
  }
}

</mosaic_0001>

<bundles_post_ra>
// kernel: tpu_custom_call.1
= control target key start
LH: loop header
LB: loop body
LE: loop exit
PB: predicated region body
PF: predicated region fallthrough
CT: control target
= control target key end

     0   :  { %12 = vsyncpa [#allocation3], 0  ;;  %s635_s0 = inlined_call_operand.hbm [shape: f32[16,16], index: 0, kind: input, shape index: {}]   ;;  %s636_s1 = inlined_call_operand.hbm [shape: bf16[16,128], index: 1, kind: input, shape index: {}]   ;;  %s637_s2 = inlined_call_operand.vmem [shape: f32[1,128], index: 2, kind: input, shape index: {}]   ;;  %s638_s3 = inlined_call_operand.hbm [shape: bf16[128,128], index: 3, kind: input, shape index: {}]   ;;  %s639_s4 = inlined_call_operand.vmem [shape: f32[1,128], index: 4, kind: input, shape index: {}]   ;;  %s640_s5 = inlined_call_operand.hbm [shape: bf16[128,128], index: 5, kind: input, shape index: {}]   ;;  %s641_s6 = inlined_call_operand.vmem [shape: f32[1,128], index: 6, kind: input, shape index: {}]   ;;  %s642_s7 = inlined_call_operand.hbm [shape: bf16[16,128], index: 7, kind: output, shape index: {}]  }
   0x1   :  { %13 = vsyncpa [#allocation6], 0 }
   0x2   :  { %14 = vsyncpa [#allocation9], 0  ;;  %s33_s26 = sshll.u32 %s636_s1, 4  ;;  %s34_s26 = int_to_ptr.hbm [resolvable:$true] %s33_s26 }
   0x3   :  { %15 = vsyncpa [#allocation4], 0  ;;  %s550_s27 = smov [#allocation5]   ;;  %s20_s8 = sshll.u32 %s635_s0, 4  ;;  %s21_s8 = int_to_ptr.hbm [resolvable:$true] %s20_s8 }
   0x4   :  { %s35_s28 = sshll.u32 %s550_s27, 4  ;;  %s551_s9 = smov 64   ;;  %s36_s28 = int_to_ptr.vmem [resolvable:$true] %s35_s28 }
   0x5   :  { %s552_s10 = smov 4   ;;  %s553_s11 = smov [#allocation2]  }
   0x6   :  { %41 = dma.hbm_to_vmem [thread:$0]  %s34_s26, 128, %s36_s28, [#allocation6], %s551_s9, %s551_s9, %s552_s10  }
   0x7   :  { %s22_s12 = sshll.u32 %s553_s11, 4  ;;  %s554_s1 = smov 128   ;;  %s23_s12 = int_to_ptr.vmem [resolvable:$true] %s22_s12 }
   0x8   :  { %s555_s13 = smov 8   ;;  %s48_s16 = sshll.u32 %s638_s3, 4  ;;  %s49_s16 = int_to_ptr.hbm [resolvable:$true] %s48_s16 }
   0x9   :  { %28 = dma.hbm_to_vmem [thread:$0]  %s21_s8, 256, %s23_s12, [#allocation3], %s554_s1, %s554_s1, %s555_s13  }
   0xa   :  { %s556_s17 = smov [#allocation7]   ;;  %s63_s20 = sshll.u32 %s640_s5, 4  ;;  %s64_s20 = int_to_ptr.hbm [resolvable:$true] %s63_s20 }
   0xb   :  { %s50_s0 = sshll.u32 %s556_s17, 4  ;;  %s557_s21 = smov [#allocation8]   ;;  %s51_s0 = int_to_ptr.vmem [resolvable:$true] %s50_s0 }
   0xc   :  { %56 = dma.hbm_to_vmem [thread:$0]  %s49_s16, 1024, %s51_s0, [#allocation6], %s551_s9, %s551_s9, %s552_s10  }
   0xd   :  { %s65_s22 = sshll.u32 %s557_s21, 4  ;;  %s66_s22 = int_to_ptr.vmem [resolvable:$true] %s65_s22 }
   0xe   :  { %71 = dma.hbm_to_vmem [thread:$0]  %s64_s20, 1024, %s66_s22, [#allocation9], %s551_s9, %s551_s9, %s552_s10  }
   0xf   :  { %542 = dma.done.wait [#allocation3], 256  }
  0x10   :  { %543 = vsyncadd [#allocation3], 4294967040 }
  0x11   :  { %544 = dma.done.wait [#allocation6], 1152  }
  0x12   :  { %545 = vsyncadd [#allocation6], 4294966144 }
  0x13   :  { %546 = dma.done.wait [#allocation9], 1024  }
  0x14   :  { %547 = vsyncadd [#allocation9], 4294966272  ;;  %v388_v0 = vld [vmem:[#allocation5] sm:$0xff]  ;;  %v91_v1 = vld [vmem:[#allocation2] sm:$0xff]  ;;  %vm106_vm0 = vcmask 130048   ;;  %s558_s26 = smov [#allocation10]  }
  0x15   :  { %v92_v2 = vld [vmem:[#allocation2 + $0x8] sm:$0xff]  ;;  %v396_v4 = vld [vmem:[#allocation7 + $0x38] sm:$0xff]  ;;  %117 = vmatpush.bf16.msra.mxu0 %v388_v0  ;;  %v394_v6 = vld [vmem:[#allocation7 + $0x28] sm:$0xff]  ;;  %s302_s27 = sshll.u32 %s558_s26, 4  ;;  %s304_s30 = sshll.u32 %s642_s7, 4  ;;  %s303_s27 = int_to_ptr.vmem [resolvable:$true] %s302_s27  ;;  %s305_s30 = int_to_ptr.hbm [resolvable:$true] %s304_s30 }
  0x16   :  { %v93_v3 = vpack.c.bf16 %v92_v2, %v91_v1  ;;  %195 = vmatpush.bf16.msra.mxu1 %v396_v4  ;;  %v395_v5 = vld [vmem:[#allocation7 + $0x30] sm:$0xff]  ;;  %v393_v7 = vld [vmem:[#allocation7 + $0x20] sm:$0xff]  ;;  %v392_v8 = vld [vmem:[#allocation7 + $0x18] sm:$0xff] }
  0x17   :  { %v391_v9 = vld [vmem:[#allocation7 + $0x10] sm:$0xff]  ;;  %v390_v10 = vld [vmem:[#allocation7 + $0x8] sm:$0xff]  ;;  %v389_v11 = vld [vmem:[#allocation7] sm:$0xff] }
  0x18   :  { %323 = vmatmul.msk.bf16.vlgmr.msra.gmra.mxu0 %vm106_vm0, %v93_v3  ;;  %v404_v12 = vld [vmem:[#allocation8 + $0x38] sm:$0xff]  ;;  %v403_v13 = vld [vmem:[#allocation8 + $0x30] sm:$0xff]  ;;  %v402_v14 = vld [vmem:[#allocation8 + $0x28] sm:$0xff] }
  0x19   :  { %280 = vmatpush.bf16.msra.mxu2 %v404_v12  ;;  %v401_v15 = vld [vmem:[#allocation8 + $0x20] sm:$0xff]  ;;  %v419_v17 = vld [vmem:[%s637_s2] ss:$0 sm:$0xff]  ;;  %v400_v24 = vld [vmem:[#allocation8 + $0x18] sm:$0xff] }
  0x1a   :  { %196 = vmatpush.bf16.msra.mxu1 %v395_v5  ;;  %v399_v25 = vld [vmem:[#allocation8 + $0x10] sm:$0xff]  ;;  %v398_v26 = vld [vmem:[#allocation8 + $0x8] sm:$0xff]  ;;  %v397_v27 = vld [vmem:[#allocation8] sm:$0xff] }
  0x1b   :  { %v420_v29 = vld [vmem:[%s639_s4] ss:$0 sm:$0xff] }
  0x1c   :  { %v421_v37 = vld [vmem:[%s641_s6] ss:$0 sm:$0xff] }
  0x1d   :  { %281 = vmatpush.bf16.msra.mxu2 %v403_v13 }
  0x1e   :  { %197 = vmatpush.bf16.msra.mxu1 %v394_v6 }
  0x21   :  { %282 = vmatpush.bf16.msra.mxu2 %v402_v14 }
  0x22   :  { %198 = vmatpush.bf16.msra.mxu1 %v393_v7 }
  0x25   :  { %283 = vmatpush.bf16.msra.mxu2 %v401_v15 }
  0x26   :  { %199 = vmatpush.bf16.msra.mxu1 %v392_v8 }
  0x29   :  { %284 = vmatpush.bf16.msra.mxu2 %v400_v24 }
  0x2a   :  { %200 = vmatpush.bf16.msra.mxu1 %v391_v9 }
  0x2d   :  { %285 = vmatpush.bf16.msra.mxu2 %v399_v25 }
  0x2e   :  { %201 = vmatpush.bf16.msra.mxu1 %v390_v10 }
  0x31   :  { %286 = vmatpush.bf16.msra.mxu2 %v398_v26 }
  0x32   :  { %202 = vmatpush.bf16.msra.mxu1 %v389_v11 }
  0x35   :  { %287 = vmatpush.bf16.msra.mxu2 %v397_v27 }
  0x95   :  { %v119_v16 = vpop.f32.mrf.mxu0 }
  0x96   :  { %v120_v18 = vadd.f32 %v419_v17, %v119_v16 }
  0x98   :  { %v124_v21 = vmax.f32 %v120_v18, 0.0 }
  0x9d   :  { %v121_v19 = vpop.f32.mrf.mxu0 }
  0x9e   :  { %v122_v20 = vadd.f32 %v419_v17, %v121_v19 }
  0xa0   :  { %v125_v22 = vmax.f32 %v122_v20, 0.0 }
  0xa2   :  { %v126_v23 = vpack.c.bf16 %v125_v22, %v124_v21 }
  0xa4   :  { %203 = vmatmul.bf16.vlgmr.msra.gmra.mxu1 %v126_v23 }
 0x121   :  { %v204_v28 = vpop.f32.mrf.mxu1 }
 0x122   :  { %v205_v30 = vadd.f32 %v420_v29, %v204_v28 }
 0x124   :  { %v209_v33 = vmax.f32 %v205_v30, 0.0 }
 0x129   :  { %v206_v31 = vpop.f32.mrf.mxu1 }
 0x12a   :  { %v207_v32 = vadd.f32 %v420_v29, %v206_v31 }
 0x12c   :  { %v210_v34 = vmax.f32 %v207_v32, 0.0 }
 0x12e   :  { %v211_v35 = vpack.c.bf16 %v210_v34, %v209_v33 }
 0x130   :  { %288 = vmatmul.bf16.vlgmr.msra.gmra.mxu2 %v211_v35 }
 0x1b3   :  { %v289_v36 = vpop.f32.mrf.mxu2 }
 0x1b4   :  { %v290_v39 = vadd.f32 %v421_v37, %v289_v36 }
 0x1bb   :  { %v291_v38 = vpop.f32.mrf.mxu2 }
 0x1bc   :  { %v292_v40 = vadd.f32 %v421_v37, %v291_v38 }
 0x1be   :  { %v408_v41 = vpack.c.bf16 %v292_v40, %v290_v39 }
 0x1c0   :  { %409 = vst [vmem:[#allocation10] sm:$0xff] %v408_v41  }
 0x1c1   :  { %310 = dma.vmem_to_hbm [thread:$0]  %s303_s27, 128, %s305_s30, [#allocation4], %s551_s9, %s551_s9, %s552_s10  }
 0x1c2   :  { %548 = dma.done.wait [#allocation4], 128  }
 0x1c3   :  { %549 = vsyncadd [#allocation4], 4294967168 }
 0x1c4   :  { %315 = vsyncpa [#allocation3], 1 }
 0x1c5   :  { %316 = vsyncpa [#allocation6], 1 }
 0x1c6   :  { %317 = vsyncpa [#allocation9], 1 }
 0x1c7   :  { %318 = vsyncpa [#allocation4], 1 }

</bundles_post_ra>
